<compile_context>
chip_gen: v7x
topology: tpu7x:2x2x1
jax: 0.10.0
libtpu: 0.0.40
codegen_flags: <defaults>
</compile_context>

<pallas_src>
import jax
import jax.numpy as jnp
import numpy as np
from jax.experimental import pallas as pl
from jax.experimental.pallas import tpu as pltpu

BN_EPS = 1e-5
LANE = 128
SUBLANE = 8


def _round_up(x, m):
    return (x + m - 1) // m * m


def _make_pgmlp_kernel(n_rows, n_rows_pad, num_layers):
    """Build the fused kernel closed over static row counts / layer count."""
    inv_m = float(1.0 / n_rows)
    last = num_layers - 1

    def kernel(x_hbm_ref, w_ref, gamma_ref, beta_ref, o_ref, act_ref, seed_sem):
        """One grid step == one Conv1d(k=1) + BatchNorm1d(train) + ReLU layer.

        x_hbm_ref: (Mp, Cp)    bf16  HBM (pl.ANY)  padded channels-last input
        w_ref:     (1, Cp, Cp) bf16  VMEM          this layer's weight (Cin x Cout)
        gamma_ref: (1, 1, Cp)  f32   VMEM          BN weight (zero in padded lanes)
        beta_ref:  (1, 1, Cp)  f32   VMEM          BN bias   (zero in padded lanes)
        o_ref:     (Mp, Cp)    f32   VMEM output   per-layer z staging slab; final result
        act_ref:   (Mp, Cp)    bf16  VMEM scratch  resident layer-to-layer activation
        seed_sem:  DMA semaphore for the one-time input seed copy
        """
        layer = pl.program_id(0)

        # Layer 0: seed the bf16 resident activation straight from HBM.  The
        # input never gets its own VMEM block, so it is free after this step.
        @pl.when(layer == 0)
        def _():
            seed = pltpu.make_async_copy(x_hbm_ref, act_ref, seed_sem)
            seed.start()
            seed.wait()

        # Pointwise conv == per-row channel matmul on the MXU (bf16 in, f32
        # acc), staged in the f32 output block so z has a named home instead of
        # an anonymous compiler temp.  Conv bias deliberately omitted: train-
        # mode BN subtracts the batch mean, so a per-channel constant cancels.
        o_ref[...] = jnp.dot(act_ref[...], w_ref[0],
                             preferred_element_type=jnp.float32)

        # One-pass BatchNorm statistics (single read of z): E[z], E[z^2].
        # Padded rows are kept zero and we divide by the true row count, so the
        # statistics are exact; the clamp guards E[z^2]-E[z]^2 cancellation.
        z = o_ref[...]
        mean = jnp.sum(z, axis=0, keepdims=True) * inv_m           # (1, Cp)
        ex2 = jnp.sum(z * z, axis=0, keepdims=True) * inv_m        # (1, Cp)
        var = jnp.maximum(ex2 - mean * mean, 0.0)

        # Fold BN into one per-channel scale/shift (one mul + one add / elem).
        scale = gamma_ref[0] * jax.lax.rsqrt(var + BN_EPS)         # (1, Cp)
        shift = beta_ref[0] - mean * scale                         # (1, Cp)

        # Normalize + ReLU fused into a single read-modify-write pass:
        #  * intermediate layers -> bf16 resident activation (padded rows kept
        #    zero so they never contaminate the next layer's statistics);
        #  * last layer -> f32 output block (padded rows sliced off by wrapper).
        @pl.when(layer != last)
        def _():
            y = jnp.maximum(o_ref[...] * scale + shift, 0.0)
            if n_rows_pad != n_rows:
                row_ok = (jax.lax.broadcasted_iota(
                    jnp.int32, (n_rows_pad, 1), 0) < n_rows)
                y = jnp.where(row_ok, y, 0.0)
            act_ref[...] = y.astype(jnp.bfloat16)

        @pl.when(layer == last)
        def _():
            o_ref[...] = jnp.maximum(o_ref[...] * scale + shift, 0.0)

    return kernel


def pack_params(layers, in_channel):
    """Pad per-layer params to a common lane-dense channel size and stack them.

    layers: list of (w (Cout, Cin), bias (Cout,), gamma (Cout,), beta (Cout,))
            in torch Conv1d (kernel-size-1 squeezed) / BatchNorm1d shapes.
    Returns (w_all bf16 (L,Cp,Cp), gamma_all f32 (L,1,Cp), beta_all f32 (L,1,Cp),
             c_last, Cp).  The conv bias is dropped (cancelled by train-mode BN).

    TODO(synk): pad each layer to its own 128-multiple (or group layers by
    padded width) instead of the global max, so heterogeneous stacks like
    3->64->128->1024 don't pay Cp_max x Cp_max matmuls on every layer.
    """
    chans = [in_channel] + [int(w.shape[0]) for (w, _, _, _) in layers]
    cpad = max(_round_up(c, LANE) for c in chans)
    num_layers = len(layers)
    w_all = np.zeros((num_layers, cpad, cpad), np.float32)
    g_all = np.zeros((num_layers, 1, cpad), np.float32)
    b_all = np.zeros((num_layers, 1, cpad), np.float32)
    for i, (w, _bias, g, be) in enumerate(layers):
        cout, cin = w.shape
        w_all[i, :cin, :cout] = np.asarray(w).T               # (Cin, Cout)
        g_all[i, 0, :cout] = np.asarray(g)
        b_all[i, 0, :cout] = np.asarray(be)
    return (jnp.asarray(w_all, dtype=jnp.bfloat16),
            jnp.asarray(g_all, dtype=jnp.float32),
            jnp.asarray(b_all, dtype=jnp.float32),
            chans[-1], cpad)


def _vmem_budget_bytes():
    """~85% of this generation's per-core VMEM (v7x 64 MiB, v5e/v6e 128 MiB)."""
    cap = None
    try:
        info = pltpu.get_tpu_info()
        cap = getattr(info, "vmem_capacity_bytes", None)
    except Exception:
        cap = None
    if not cap:
        cap = 64 * 1024 * 1024        # conservative fallback (v7x per-TensorCore)
    return int(cap * 0.85)


def pgmlp_forward(points_bcn, packed):
    """points_bcn: [B, C, N] (torch layout), f32.  Returns [B, N, C_last] f32."""
    w_all, gamma_all, beta_all, c_last, cpad = packed
    num_layers = w_all.shape[0]
    B, C, N = points_bcn.shape
    M = B * N
    m_pad = _round_up(M, SUBLANE)

    # [B, C, N] -> [B*N, C] channels-last; zero-pad rows to a sublane multiple
    # and channels to 128 lanes; carry the single HBM input pass in bf16.
    # TODO(synk): fuse this pad+cast into the layer-0 seed DMA (feed the raw
    # (M, C) f32 array via pl.ANY) to drop the extra padded HBM copy entirely.
    x = jnp.transpose(points_bcn, (0, 2, 1)).reshape(M, C)
    x = jnp.pad(x, ((0, m_pad - M), (0, cpad - C))).astype(jnp.bfloat16)

    # VMEM accounting: f32 z/output slab + bf16 resident activation +
    # double-buffered bf16 weight + double-buffered BN affine + slack.
    # (The bf16 input stays in HBM and never gets its own VMEM block.)
    need = (m_pad * cpad * 4            # o_ref: f32 z staging / output slab
            + m_pad * cpad * 2          # act_ref: bf16 resident activation
            + 2 * cpad * cpad * 2       # weight block, double-buffered
            + 2 * 2 * cpad * 4          # gamma/beta blocks, double-buffered
            + 2 * 1024 * 1024)          # Mosaic internal scratch / temps slack
    budget = _vmem_budget_bytes()
    if need > budget:
        # TODO(synk): row-tiled two-pass BN streaming fallback (per-tile partial
        # sums over a "parallel" M axis; also uses both v7x TensorCores).
        raise NotImplementedError(
            f"activation too large for the VMEM-resident fused path "
            f"(need ~{need >> 20} MiB, budget {budget >> 20} MiB)")

    kernel = _make_pgmlp_kernel(M, m_pad, num_layers)

    out = pl.pallas_call(
        kernel,
        out_shape=jax.ShapeDtypeStruct((m_pad, cpad), jnp.float32),
        grid_spec=pltpu.PrefetchScalarGridSpec(
            num_scalar_prefetch=0,
            grid=(num_layers,),
            in_specs=[
                # Input stays in HBM; DMA'd once into the activation scratch.
                pl.BlockSpec(memory_space=pl.ANY),
                # Per-layer padded weight / BN affine params (double-buffered so
                # the next layer's weight DMA overlaps this layer's compute).
                pl.BlockSpec((1, cpad, cpad), lambda l: (l, 0, 0)),
                pl.BlockSpec((1, 1, cpad), lambda l: (l, 0, 0)),
                pl.BlockSpec((1, 1, cpad), lambda l: (l, 0, 0)),
            ],
            # Output block index never changes -> VMEM-resident across all
            # layers (doubles as the f32 z staging slab) and written back to
            # HBM exactly once after the last layer.
            out_specs=pl.BlockSpec((m_pad, cpad), lambda l: (0, 0)),
            scratch_shapes=[
                pltpu.VMEM((m_pad, cpad), jnp.bfloat16),   # resident activation
                pltpu.SemaphoreType.DMA,                   # layer-0 seed copy
            ],
        ),
        compiler_params=pltpu.CompilerParams(
            dimension_semantics=("arbitrary",),   # layers are sequentially dependent
            vmem_limit_bytes=budget,
        ),
    )(x, w_all, gamma_all, beta_all)

    # torch returns points.permute(0, 2, 1) == [B, N, C_last]; channels-last
    # layout makes that a row/lane slice + reshape.
    return out[:M, :c_last].reshape(B, N, c_last)


def init_params(key, in_channel, hidden):
    """Deterministic synthetic parameters in torch PGMLP shapes."""
    layers = []
    last = in_channel
    for out_channel in hidden:
        key, kw, kb, kg, kbe = jax.random.split(key, 5)
        w = jax.random.normal(kw, (out_channel, last), jnp.float32) * 0.1
        b = jax.random.normal(kb, (out_channel,), jnp.float32) * 0.1
        g = 1.0 + 0.1 * jax.random.normal(kg, (out_channel,), jnp.float32)
        be = 0.1 * jax.random.normal(kbe, (out_channel,), jnp.float32)
        layers.append((w, b, g, be))
        last = out_channel
    return layers


def _reference_f32(points_bcn, layers):
    """Pure-f32 torch-semantics reference (training-mode BN, WITH conv bias)."""
    x = jnp.transpose(points_bcn, (0, 2, 1))                  # (B, N, C)
    for (w, b, g, be) in layers:
        z = jnp.einsum("bnc,oc->bno", x, w) + b
        mean = jnp.mean(z, axis=(0, 1), keepdims=True)
        var = jnp.mean((z - mean) ** 2, axis=(0, 1), keepdims=True)
        x = jnp.maximum((z - mean) * (g / jnp.sqrt(var + BN_EPS)) + be, 0.0)
    return x


def _reference_matched(points_bcn, layers):
    """Reference matching the kernel's numerics (bf16 matmul inputs, bf16
    resident activations between layers, no conv bias, f32 BN)."""
    x = jnp.transpose(points_bcn, (0, 2, 1)).astype(jnp.bfloat16)   # (B, N, C)
    y = None
    for (w, _b, g, be) in layers:
        z = jnp.einsum("bnc,oc->bno", x, w.astype(jnp.bfloat16),
                       preferred_element_type=jnp.float32)
        mean = jnp.mean(z, axis=(0, 1), keepdims=True)
        var = jnp.mean((z - mean) ** 2, axis=(0, 1), keepdims=True)
        scale = g * jax.lax.rsqrt(var + BN_EPS)
        shift = be - mean * scale
        y = jnp.maximum(z * scale + shift, 0.0)
        x = y.astype(jnp.bfloat16)
    return y


if __name__ == "__main__":
    key = jax.random.PRNGKey(0)
    B, C, N = 2, 4, 16
    hidden = (32, 16)

    key, kx = jax.random.split(key)
    points = jax.random.normal(kx, (B, C, N), jnp.float32)    # torch [B, C, N]

    layers = init_params(key, C, hidden)
    packed = pack_params(layers, C)

    out = pgmlp_forward(points, packed)
    out = jax.block_until_ready(out)
    assert out.shape == (B, N, hidden[-1])

    # Tight check vs a reference with matching numerics (bf16 MXU inputs and
    # bf16 resident activation between layers).
    ref_tight = _reference_matched(points, layers)
    np.testing.assert_allclose(np.asarray(out), np.asarray(ref_tight),
                               atol=5e-3, rtol=5e-3)

    # Fidelity check vs the full-f32 torch-semantics reference (includes the
    # conv bias, which train-mode BN cancels); tolerance covers bf16 matmul.
    ref_f32 = _reference_f32(points, layers)
    np.testing.assert_allclose(np.asarray(out), np.asarray(ref_f32),
                               atol=3e-2, rtol=3e-2)

    print("KERNEL_OK")
</pallas_src>

<mosaic_0001>
module attributes {stable_mosaic.version = 11 : i64} {
  func.func @kernel(%arg0: i32, %arg1: memref<32x128xbf16, #tpu.memory_space<any>>, %arg2: memref<1x128x128xbf16, #tpu.memory_space<vmem>>, %arg3: memref<1x1x128xf32, #tpu.memory_space<vmem>>, %arg4: memref<1x1x128xf32, #tpu.memory_space<vmem>>, %arg5: memref<32x128xf32, #tpu.memory_space<vmem>>, %arg6: memref<32x128xbf16, #tpu.memory_space<vmem>>, %arg7: memref<!tpu.dma_semaphore, #tpu.memory_space<semaphore_mem>>) attributes {dimension_semantics = [#tpu.dimension_semantics<arbitrary>], iteration_bounds = array<i64: 2>, scalar_prefetch = 0 : i64, scratch_operands = 2 : i64, tpu.core_type = #tpu.core_type<tc>, window_params = [{}, {transform_indices = @transform_1, window_bounds = array<i64: 1, 128, 128>}, {transform_indices = @transform_2, window_bounds = array<i64: 1, 1, 128>}, {transform_indices = @transform_3, window_bounds = array<i64: 1, 1, 128>}, {pipeline_mode = #tpu.pipeline_mode<synchronous>, transform_indices = @transform_4, window_bounds = array<i64: 32, 128>}]} {
    %c0_i32 = arith.constant 0 : i32
    %0 = arith.cmpi eq, %arg0, %c0_i32 : i32
    %1 = arith.extui %0 : i1 to i32
    %c0_i32_0 = arith.constant 0 : i32
    %2 = arith.cmpi ne, %1, %c0_i32_0 : i32
    scf.if %2 {
      tpu.enqueue_dma source(%arg1 : memref<32x128xbf16, #tpu.memory_space<any>>) target(%arg6 : memref<32x128xbf16, #tpu.memory_space<vmem>>) target_semaphore(%arg7 : memref<!tpu.dma_semaphore, #tpu.memory_space<semaphore_mem>>)
      tpu.wait_dma2 semaphore(%arg7 : memref<!tpu.dma_semaphore, #tpu.memory_space<semaphore_mem>>) src(%arg1 : memref<32x128xbf16, #tpu.memory_space<any>>) dst(%arg6 : memref<32x128xbf16, #tpu.memory_space<vmem>>)
    } else {
    }
    %c0 = arith.constant 0 : index
    %c0_1 = arith.constant 0 : index
    %3 = vector.load %arg6[%c0, %c0_1] : memref<32x128xbf16, #tpu.memory_space<vmem>>, vector<32x128xbf16>
    %c0_2 = arith.constant 0 : index
    %c0_3 = arith.constant 0 : index
    %c0_4 = arith.constant 0 : index
    %4 = vector.load %arg2[%c0_2, %c0_3, %c0_4] : memref<1x128x128xbf16, #tpu.memory_space<vmem>>, vector<1x128x128xbf16>
    %5 = vector.shape_cast %4 : vector<1x128x128xbf16> to vector<128x128xbf16>
    %cst = arith.constant dense<0.000000e+00> : vector<32x128xf32>
    %6 = tpu.matmul %3, %5, %cst {dimension_numbers = #tpu.dot_dimension_numbers<[1], [0], [0], [1], [0, 0, 1, 1], [], []>} : vector<32x128xbf16>, vector<128x128xbf16>, vector<32x128xf32> -> vector<32x128xf32>
    %c0_5 = arith.constant 0 : index
    %c0_6 = arith.constant 0 : index
    %7 = vector.load %arg5[%c0_5, %c0_6] : memref<32x128xf32, #tpu.memory_space<vmem>>, vector<32x128xf32>
    tpu.vector_store %arg5[%c0_5, %c0_6], %6 {strides = array<i32>} : memref<32x128xf32, #tpu.memory_space<vmem>>, vector<32x128xf32>,
    %c0_7 = arith.constant 0 : index
    %c0_8 = arith.constant 0 : index
    %8 = vector.load %arg5[%c0_7, %c0_8] : memref<32x128xf32, #tpu.memory_space<vmem>>, vector<32x128xf32>
    %cst_9 = arith.constant dense<0.000000e+00> : vector<128xf32>
    %9 = vector.multi_reduction <add>, %8, %cst_9 [0] : vector<32x128xf32> to vector<128xf32>
    %10 = vector.shape_cast %9 : vector<128xf32> to vector<1x128xf32>
    %cst_10 = arith.constant 3.125000e-02 : f32
    %11 = vector.broadcast %cst_10 : f32 to vector<1x128xf32>
    %12 = arith.mulf %10, %11 : vector<1x128xf32>
    %13 = arith.mulf %8, %8 : vector<32x128xf32>
    %cst_11 = arith.constant dense<0.000000e+00> : vector<128xf32>
    %14 = vector.multi_reduction <add>, %13, %cst_11 [0] : vector<32x128xf32> to vector<128xf32>
    %15 = vector.shape_cast %14 : vector<128xf32> to vector<1x128xf32>
    %cst_12 = arith.constant 3.125000e-02 : f32
    %16 = vector.broadcast %cst_12 : f32 to vector<1x128xf32>
    %17 = arith.mulf %15, %16 : vector<1x128xf32>
    %18 = arith.mulf %12, %12 : vector<1x128xf32>
    %19 = arith.subf %17, %18 : vector<1x128xf32>
    %cst_13 = arith.constant 0.000000e+00 : f32
    %20 = vector.broadcast %cst_13 : f32 to vector<1x128xf32>
    %21 = arith.maximumf %19, %20 : vector<1x128xf32>
    %c0_14 = arith.constant 0 : index
    %c0_15 = arith.constant 0 : index
    %c0_16 = arith.constant 0 : index
    %22 = vector.load %arg3[%c0_14, %c0_15, %c0_16] : memref<1x1x128xf32, #tpu.memory_space<vmem>>, vector<1x1x128xf32>
    %23 = vector.shape_cast %22 : vector<1x1x128xf32> to vector<1x128xf32>
    %cst_17 = arith.constant 9.99999974E-6 : f32
    %24 = vector.broadcast %cst_17 : f32 to vector<1x128xf32>
    %25 = arith.addf %21, %24 : vector<1x128xf32>
    %26 = math.rsqrt %25 : vector<1x128xf32>
    %27 = arith.mulf %23, %26 : vector<1x128xf32>
    %c0_18 = arith.constant 0 : index
    %c0_19 = arith.constant 0 : index
    %c0_20 = arith.constant 0 : index
    %28 = vector.load %arg4[%c0_18, %c0_19, %c0_20] : memref<1x1x128xf32, #tpu.memory_space<vmem>>, vector<1x1x128xf32>
    %29 = vector.shape_cast %28 : vector<1x1x128xf32> to vector<1x128xf32>
    %30 = arith.mulf %12, %27 : vector<1x128xf32>
    %31 = arith.subf %29, %30 : vector<1x128xf32>
    %c1_i32 = arith.constant 1 : i32
    %32 = arith.cmpi ne, %arg0, %c1_i32 : i32
    %33 = arith.extui %32 : i1 to i32
    %c0_i32_21 = arith.constant 0 : i32
    %34 = arith.cmpi ne, %33, %c0_i32_21 : i32
    scf.if %34 {
      %c0_24 = arith.constant 0 : index
      %c0_25 = arith.constant 0 : index
      %38 = vector.load %arg5[%c0_24, %c0_25] : memref<32x128xf32, #tpu.memory_space<vmem>>, vector<32x128xf32>
      %39 = vector.broadcast %27 : vector<1x128xf32> to vector<32x128xf32>
      %40 = arith.mulf %38, %39 : vector<32x128xf32>
      %41 = vector.broadcast %31 : vector<1x128xf32> to vector<32x128xf32>
      %42 = arith.addf %40, %41 : vector<32x128xf32>
      %cst_26 = arith.constant 0.000000e+00 : f32
      %43 = vector.broadcast %cst_26 : f32 to vector<32x128xf32>
      %44 = arith.maximumf %42, %43 : vector<32x128xf32>
      %45 = arith.truncf %44 : vector<32x128xf32> to vector<32x128xbf16>
      %c0_27 = arith.constant 0 : index
      %c0_28 = arith.constant 0 : index
      %46 = vector.load %arg6[%c0_27, %c0_28] : memref<32x128xbf16, #tpu.memory_space<vmem>>, vector<32x128xbf16>
      tpu.vector_store %arg6[%c0_27, %c0_28], %45 {strides = array<i32>} : memref<32x128xbf16, #tpu.memory_space<vmem>>, vector<32x128xbf16>,
    } else {
    }
    %c1_i32_22 = arith.constant 1 : i32
    %35 = arith.cmpi eq, %arg0, %c1_i32_22 : i32
    %36 = arith.extui %35 : i1 to i32
    %c0_i32_23 = arith.constant 0 : i32
    %37 = arith.cmpi ne, %36, %c0_i32_23 : i32
    scf.if %37 {
      %c0_24 = arith.constant 0 : index
      %c0_25 = arith.constant 0 : index
      %38 = vector.load %arg5[%c0_24, %c0_25] : memref<32x128xf32, #tpu.memory_space<vmem>>, vector<32x128xf32>
      %39 = vector.broadcast %27 : vector<1x128xf32> to vector<32x128xf32>
      %40 = arith.mulf %38, %39 : vector<32x128xf32>
      %41 = vector.broadcast %31 : vector<1x128xf32> to vector<32x128xf32>
      %42 = arith.addf %40, %41 : vector<32x128xf32>
      %cst_26 = arith.constant 0.000000e+00 : f32
      %43 = vector.broadcast %cst_26 : f32 to vector<32x128xf32>
      %44 = arith.maximumf %42, %43 : vector<32x128xf32>
      %c0_27 = arith.constant 0 : index
      %c0_28 = arith.constant 0 : index
      %45 = vector.load %arg5[%c0_27, %c0_28] : memref<32x128xf32, #tpu.memory_space<vmem>>, vector<32x128xf32>
      tpu.vector_store %arg5[%c0_27, %c0_28], %44 {strides = array<i32>} : memref<32x128xf32, #tpu.memory_space<vmem>>, vector<32x128xf32>,
    } else {
    }
    return
  }
  func.func @transform_1(%arg0: i32) -> (i32, i32, i32) {
    %c0_i32 = arith.constant 0 : i32
    %c0_i32_0 = arith.constant 0 : i32
    %c0_i32_1 = arith.constant 0 : i32
    return %arg0, %c0_i32, %c0_i32_0 : i32, i32, i32
  }
  func.func @transform_2(%arg0: i32) -> (i32, i32, i32) {
    %c0_i32 = arith.constant 0 : i32
    %c0_i32_0 = arith.constant 0 : i32
    %c0_i32_1 = arith.constant 0 : i32
    return %arg0, %c0_i32, %c0_i32_0 : i32, i32, i32
  }
  func.func @transform_3(%arg0: i32) -> (i32, i32, i32) {
    %c0_i32 = arith.constant 0 : i32
    %c0_i32_0 = arith.constant 0 : i32
    %c0_i32_1 = arith.constant 0 : i32
    return %arg0, %c0_i32, %c0_i32_0 : i32, i32, i32
  }
  func.func @transform_4(%arg0: i32) -> (i32, i32) {
    %c0_i32 = arith.constant 0 : i32
    %c0_i32_0 = arith.constant 0 : i32
    %c0_i32_1 = arith.constant 0 : i32
    return %c0_i32, %c0_i32_0 : i32, i32
  }
}

</mosaic_0001>

<bundles_post_ra>
// kernel: tpu_custom_call.1
= control target key start
LH: loop header
LB: loop body
LE: loop exit
PB: predicated region body
PF: predicated region fallthrough
CT: control target
= control target key end

     0   :  { %9 = vsyncpa [#allocation5], 0  ;;  %s1001_s0 = inlined_call_operand.hbm [shape: bf16[32,128], index: 0, kind: input, shape index: {}]   ;;  %s1002_s1 = inlined_call_operand.hbm [shape: bf16[2,128,128], index: 1, kind: input, shape index: {}]   ;;  %s1003_s2 = inlined_call_operand.vmem [shape: f32[2,1,128], index: 2, kind: input, shape index: {}]   ;;  %s1004_s3 = inlined_call_operand.vmem [shape: f32[2,1,128], index: 3, kind: input, shape index: {}]   ;;  %s1005_s4 = inlined_call_operand.hbm [shape: f32[32,128], index: 4, kind: output, shape index: {}]  }
   0x1   :  { %11 = vsyncpa [#allocation5 + $0x1], 0 }
   0x2   :  { %12 = vsyncpa [#allocation6], 0  ;;  %s816_s15 = smov 0   ;;  %s818_s16 = smov 0  }
   0x3   :  { %s820_s17 = smov 0   ;;  %s822_s18 = smov 0  }
   0x4 LB: > { %s835_s19 = sadd.s32 4294967295, %s782_s18   ;;  %s838_s20 = sadd.s32 1, %s782_s18   ;;  %s782_s18 = sphi %s822_s18, %s1018_s18   ;;  %s778_s17 = sphi %s820_s17, %s1017_s17   ;;  %s774_s16 = sphi %s818_s16, %s1016_s16   ;;  %s770_s15 = sphi %s816_s15, %s1015_s15  }
   0x5   : > { %s22_s21 = ssub.s32 %s782_s18, %s838_s20  ;;  %s25_s22 = sadd.s32 1, %s778_s17 }
   0x6   : > { %p23_p0 = scmp.eq.s32.totalorder %s22_s21, 0  ;;  %p32_p1 = scmp.ne.s32.totalorder %s778_s17, %s774_s16 }
   0x7   : > { %p33_p2 = scmp.eq.s32.totalorder %s782_s18, 0  ;;  %p38_p3 = scmp.ne.s32.totalorder %s774_s16, %s770_s15 }
   0x8   : > { %s848_s23 = scalar_select %p23_p0, %s778_s17, %s25_s22  }
   0x9   : > { %p34_p4 = por %p33_p2, %p32_p1  ;;  %p1006_p5 = scmp.eq.s32.totalorder %s835_s19, 0 }
   0xa   : > { %p606_p6 = scmp.lt.s32.totalorder %s782_s18, 2  ;;  %s135_s25 = sand.u32 1, %s778_s17  }
   0xb   : > { %p854_p7 = por %p1006_p5, %p38_p3  ;;  %s541_s26 = sshll.u32 %s135_s25, 6 }
   0xc   : > { %s562_s27 = sshll.u32 %s782_s18, 10  ;;  %s139_s5 = scalar_lea.vmem [#allocation4], %s541_s26 }
   0xd   : > { %s863_s30 = scalar_lea.hbm %s1002_s1, %s562_s27  ;;  %s146_s6 = sshll.u32 %s139_s5, 4  ;;  %s865_s6 = int_to_ptr.vmem [resolvable:$true] %s146_s6 }
   0xe   : > { %p867_p8 = pnand %p606_p6, %p34_p4  ;;  %s872_s8 = scalar_lea.sflag [#allocation5], %s135_s25 }
   0xf   : > { %s658_s9 = scalar_lea.hbm %s863_s30, 1024  ;;  %s663_s12 = scalar_lea.hbm %s1002_s1, 2048 }
  0x10   : > { %p659_p10 = scmp.ne.s32.totalorder %s863_s30, %s658_s9  ;;  %p660_p11 = pneg %p867_p8 }
  0x11   : > { %p664_p0 = scmp.lt.u32.totalorder %s863_s30, %s1002_s1  ;;  %p665_p1 = scmp.lt.u32.totalorder %s663_s12, %s658_s9 }
  0x12   : > { %p661_p12 = pnand %p660_p11, %p659_p10  ;;  %p667_p3 = scmp.lt.u32.totalorder %s658_s9, %s863_s30 }
  0x13   : > { %p666_p2 = por %p665_p1, %p664_p0 }
  0x14   : > { %p662_p13 = pneg %p661_p12 }
  0x15   : > { %p668_p4 = por %p667_p3, %p666_p2 }
  0x17   : > { %p669_p6 = pnand %p668_p4, %p662_p13 }
  0x19   : > { %672 = shalt.err (!%p669_p6)
}
  0x1a   : > { %s673_s15 = scalar_lea.vmem %s865_s6, 1024  ;;  %s784_s21 = smov [#allocation4]  }
  0x1b   : > { %p674_p10 = scmp.ne.s32.totalorder %s865_s6, %s673_s15  ;;  %s678_s22 = sshll.u32 %s784_s21, 4  ;;  %s679_s22 = int_to_ptr.vmem [resolvable:$false] %s678_s22 }
  0x1c   : > { %s680_s25 = scalar_lea.vmem %s679_s22, 2048  ;;  %p681_p9 = scmp.lt.s32.totalorder %s865_s6, %s679_s22 }
  0x1d   : > { %p676_p12 = pnand %p674_p10, %p660_p11  ;;  %p682_p0 = scmp.lt.s32.totalorder %s680_s25, %s673_s15 }
  0x1f   : > { %p677_p5 = pneg %p676_p12  ;;  %p683_p1 = por %p682_p0, %p681_p9 }
  0x21   : > { %p684_p2 = pnand %p683_p1, %p677_p5 }
  0x23   : > { %687 = shalt.err (!%p684_p2)
}
  0x24   : > { %s785_s26 = smov 64   ;;  %s786_s27 = smov 4  }
  0x25   : > { %605 = dma.hbm_to_vmem [thread:$0]  (!%p867_p8), %s863_s30, 1024, %s865_s6, %s872_s8, %s785_s26, %s785_s26, %s786_s27  }
  0x26   : > { %p166_p11 = scmp.lt.s32.totalorder %s782_s18, 3  ;;  %p1009_p13 = scmp.ge.s32.totalorder %s782_s18, 1 }
  0x28   : > { %p167_p3 = pnand %p1009_p13, %p166_p11 }
  0x29   : > { %s172_s28 = sand.u32 (!%p167_p3), 1, %s774_s16  }
  0x2a   : > { %170 = sbr.rel (%p167_p3) target bundleno = 421 (0x1a5), region = 32  ;;  %s545_s29 = sshll.u32 (!%p167_p3), %s172_s28, 6 }
  0x2b   : > { %s173_s5 = scalar_lea.sflag (!%p167_p3), [#allocation5], %s172_s28  ;;  %s904_s9 = scalar_lea.vmem (!%p167_p3), [#allocation4], %s545_s29 }
  0x31   : > { %757 = dma.done.wait (%p854_p7), %s173_s5, 1024  }
  0x32   : > { %759 = vsyncadd (%p854_p7), %s173_s5, 4294966272  ;;  %p200_p5 = scmp.lt.s32.totalorder %s835_s19, 1  ;;  %s787_s18 = smov [#allocation2]  }
  0x33   : > { %s218_s6 = sshll.u32 %s787_s18, 4  ;;  %s688_s15 = scalar_lea.hbm %s1001_s0, 256  ;;  %s219_s6 = int_to_ptr.vmem [resolvable:$true] %s218_s6 }
  0x34   : > { %s912_s30 = scalar_select %p200_p5, %s835_s19, 1 }
  0x35   : > { %p689_p7 = scmp.ne.s32.totalorder %s1001_s0, %s688_s15  ;;  %p1010_p8 = scmp.eq.s32.totalorder %s835_s19, 0 }
  0x36   : > { %s202_s10 = scalar_lea.vmem %s1003_s2, %s912_s30  ;;  %s205_s13 = scalar_lea.vmem %s1004_s3, %s912_s30 }
  0x37   : > { %p690_p9 = pnand %p689_p7, %p1010_p8  ;;  %p694_p6 = scmp.lt.u32.totalorder %s688_s15, %s1001_s0 }
  0x39   : > { %p691_p4 = pneg %p690_p9 }
  0x3b   : > { %p696_p10 = pnand %p694_p6, %p691_p4 }
  0x3d   : > { %699 = shalt.err (!%p696_p10)  }
  0x3e   : > { %s700_s27 = scalar_lea.vmem %s219_s6, 256  ;;  %p1011_p0 = pmov %p1010_p8 }
  0x3f   : > { %p701_p12 = scmp.ne.s32.totalorder %s219_s6, %s700_s27  ;;  %p707_p11 = scmp.lt.s32.totalorder %s219_s6, %s219_s6 }
  0x40   : > { %p708_p13 = scmp.lt.s32.totalorder %s700_s27, %s700_s27 }
  0x41   : > { %p702_p1 = pnand %p701_p12, %p1011_p0 }
  0x42   : > { %p709_p3 = por %p708_p13, %p707_p11 }
  0x43   : > { %p703_p2 = pneg %p702_p1 }
  0x45   : > { %p710_p5 = pnand %p709_p3, %p703_p2 }
  0x47   : > { %713 = shalt.err (!%p710_p5)  }
  0x48   : > { %p1012_p7 = pmov %p1011_p0  ;;  %p1013_p8 = pmov %p1011_p0 }
  0x4a   : > { %596 = dma.hbm_to_vmem [thread:$0]  (%p1012_p7), %s1001_s0, 256, %s219_s6, [#allocation3] }
  0x4b   : > { %761 = dma.done.wait (%p1013_p8), [#allocation3], 256  ;;  %p1014_p9 = pmov %p1011_p0 }
  0x4c   : > { %v648_v0 = vld [vmem:[%s904_s9] sm:$0xff]   ;;  %v649_v1 = vld [vmem:[%s904_s9 + $0x8] sm:$0xff]   ;;  %v650_v2 = vld [vmem:[%s904_s9 + $0x10] sm:$0xff]   ;;  %p555_p4 = scmp.eq.s32.totalorder %s835_s19, 1 }
  0x4d   : > { %763 = vsyncadd (%p1014_p9), [#allocation3], 4294967040  ;;  %573 = vmatprep.subr.bf16.mxu0 %v648_v0  ;;  %v651_v3 = vld [vmem:[%s904_s9 + $0x18] sm:$0xff]   ;;  %v226_v4 = vld [vmem:[#allocation2] sm:$0xff]  ;;  %v392_v48 = vlaneseq (!%p555_p4) }
  0x4e   : > { %574 = vmatpush3.bf16.msra.mxu0 %v648_v0  ;;  %589 = vmatprep.mubr.bf16.mxu0 %v226_v4  ;;  %v652_v5 = vld [vmem:[%s904_s9 + $0x20] sm:$0xff]   ;;  %v653_v6 = vld [vmem:[%s904_s9 + $0x28] sm:$0xff]   ;;  %v654_v7 = vld [vmem:[%s904_s9 + $0x30] sm:$0xff]  }
  0x4f   : > { %575 = vmatprep.subr.bf16.mxu0 %v649_v1  ;;  %v655_v8 = vld [vmem:[%s904_s9 + $0x38] sm:$0xff]   ;;  %v376_v42 = vld [vmem:[%s202_s10] sm:$0x1]  ;;  %v393_v49 = vshrl.u32 (!%p555_p4), %v392_v48, 7 }
  0x50   : > { %v227_v9 = vld [vmem:[#allocation2 + $0x8] sm:$0xff]  ;;  %v380_v45 = vld [vmem:[%s205_s13] sm:$0x1] }
  0x51   : > { %v394_v51 = vsub.s32 (!%p555_p4), 0, %v393_v49 }
  0x52   : > { %576 = vmatpush3.bf16.msra.mxu0 %v649_v1 }
  0x53   : > { %577 = vmatprep.subr.bf16.mxu0 %v650_v2 }
  0x56   : > { %578 = vmatpush3.bf16.msra.mxu0 %v650_v2 }
  0x57   : > { %579 = vmatprep.subr.bf16.mxu0 %v651_v3 }
  0x5a   : > { %580 = vmatpush3.bf16.msra.mxu0 %v651_v3 }
  0x5b   : > { %581 = vmatprep.subr.bf16.mxu0 %v652_v5 }
  0x5e   : > { %582 = vmatpush3.bf16.msra.mxu0 %v652_v5 }
  0x5f   : > { %583 = vmatprep.subr.bf16.mxu0 %v653_v6 }
  0x62   : > { %584 = vmatpush3.bf16.msra.mxu0 %v653_v6 }
  0x63   : > { %585 = vmatprep.subr.bf16.mxu0 %v654_v7 }
  0x66   : > { %586 = vmatpush3.bf16.msra.mxu0 %v654_v7 }
  0x67   : > { %587 = vmatprep.subr.bf16.mxu0 %v655_v8 }
  0x6a   : > { %588 = vmatpush3.bf16.msra.mxu0 %v655_v8 }
  0x6d   : > { %590 = vmatmul.mubr.bf16.vlgmr.msra.gmra.mrb[0].mxu0 %v227_v9 }
 0x140   : > { %v591_v10 = vpop.f32.mrb[0].mxu0 }
 0x141   : > { %343 = vst [vmem:[#allocation7 + $0x10] sm:$0xff] %v591_v10  ;;  %v326_v11 = vpop.f32.mrb[1].mxu0  ;;  %v361_v17 = vmul.f32 %v591_v10, %v591_v10 }
 0x142   : > { %341 = vst [vmem:[#allocation7] sm:$0xff] %v326_v11  ;;  %v592_v12 = vpop.f32.mrb[2].mxu0  ;;  %v359_v14 = vmul.f32 %v326_v11, %v326_v11 }
 0x143   : > { %344 = vst [vmem:[#allocation7 + $0x18] sm:$0xff] %v592_v12  ;;  %v329_v13 = vpop.f32.mrb[3].mxu0  ;;  %v362_v20 = vmul.f32 %v592_v12, %v592_v12 }
 0x144   : > { %342 = vst [vmem:[#allocation7 + $0x8] sm:$0xff] %v329_v13  ;;  %v349_v15 = vadd.f32 %v329_v13, %v326_v11  ;;  %v360_v16 = vmul.f32 %v329_v13, %v329_v13 }
 0x146   : > { %v350_v18 = vadd.f32 %v591_v10, %v349_v15  ;;  %v363_v19 = vadd.f32 %v360_v16, %v359_v14 }
 0x148   : > { %v351_v21 = vadd.f32 %v592_v12, %v350_v18  ;;  %v364_v22 = vadd.f32 %v363_v19, %v361_v17  ;;  %v389_v53 = vld [vmem:[#allocation7 + $0x10] sm:$0xff] (!%p555_p4) }
 0x149   : > { %v387_v50 = vld [vmem:[#allocation7] sm:$0xff] (!%p555_p4) }
 0x14a   : > { %v352_v23 = vrot.slane %v351_v21, 4  ;;  %v365_v24 = vadd.f32 %v364_v22, %v362_v20  ;;  %v390_v54 = vld [vmem:[#allocation7 + $0x18] sm:$0xff] (!%p555_p4) }
 0x14b   : > { %v388_v52 = vld [vmem:[#allocation7 + $0x8] sm:$0xff] (!%p555_p4) }
 0x14c   : > { %v353_v25 = vadd.f32 %v352_v23, %v351_v21  ;;  %v366_v26 = vrot.slane %v365_v24, 4 }
 0x14e   : > { %v354_v27 = vrot.slane %v353_v25, 2  ;;  %v367_v28 = vadd.f32 %v366_v26, %v365_v24 }
 0x150   : > { %v355_v29 = vadd.f32 %v354_v27, %v353_v25  ;;  %v368_v30 = vrot.slane %v367_v28, 2 }
 0x152   : > { %v356_v31 = vrot.slane %v355_v29, 1  ;;  %v369_v32 = vadd.f32 %v368_v30, %v367_v28 }
 0x154   : > { %v357_v33 = vadd.f32 %v356_v31, %v355_v29  ;;  %v370_v34 = vrot.slane %v369_v32, 1 }
 0x156   : > { %v358_v35 = vmul.f32 0.03125, %v357_v33  ;;  %v371_v36 = vadd.f32 %v370_v34, %v369_v32 }
 0x158   : > { %v372_v37 = vmul.f32 0.03125, %v371_v36  ;;  %v373_v38 = vmul.f32 %v358_v35, %v358_v35 }
 0x15a   : > { %v374_v39 = vsub.f32 %v372_v37, %v373_v38 }
 0x15c   : > { %v375_v40 = vmax.f32 %v374_v39, 0.0 }
 0x15e   : > { %v377_v41 = vadd.f32 1e-05, %v375_v40 }
 0x160   : > { %656 = vrsqrt.f32 %v377_v41 }
 0x169   : > { %386 = sbr.rel (%p555_p4) target bundleno = 378 (0x17a), region = 48 }
 0x16a   : > { %v657_v43 = vpop.eup %656 }
 0x16b   : > { %v379_v44 = vmul.f32 %v657_v43, %v376_v42 }
 0x16d   : > { %v381_v46 = vmul.f32 %v379_v44, %v358_v35  ;;  %v395_v55 = vrot.slane (!%p555_p4), %v379_v44, %v394_v51 }
 0x16f   : > { %v382_v47 = vsub.f32 %v380_v45, %v381_v46  ;;  %v397_v57 = vmul.f32 (!%p555_p4), %v395_v55, %v387_v50  ;;  %v398_v58 = vmul.f32 (!%p555_p4), %v395_v55, %v388_v52  ;;  %v399_v59 = vmul.f32 (!%p555_p4), %v395_v55, %v389_v53 }
 0x170   : > { %v400_v60 = vmul.f32 %v395_v55, %v390_v54 }
 0x171   : > { %v405_v56 = vrot.slane %v382_v47, %v394_v51 }
 0x173   : > { %v407_v61 = vadd.f32 %v405_v56, %v397_v57  ;;  %v408_v62 = vadd.f32 %v405_v56, %v398_v58  ;;  %v409_v63 = vadd.f32 %v405_v56, %v399_v59  ;;  %v410_v0 = vadd.f32 %v405_v56, %v400_v60 }
 0x175   : > { %v411_v1 = vmax.f32 %v407_v61, 0.0  ;;  %v412_v2 = vmax.f32 %v408_v62, 0.0  ;;  %v413_v3 = vmax.f32 %v409_v63, 0.0  ;;  %v414_v4 = vmax.f32 %v410_v0, 0.0 }
 0x177   : > { %v415_v5 = vpack.c.bf16 %v412_v2, %v411_v1  ;;  %v416_v6 = vpack.c.bf16 %v414_v4, %v413_v3 }
 0x179   : > { %417 = vst [vmem:[#allocation2] sm:$0xff] %v415_v5  ;;  %418 = vst [vmem:[#allocation2 + $0x8] sm:$0xff] %v416_v6 }
 0x17a PF: > { %p556_p6 = scmp.ne.s32.totalorder %s835_s19, 1 }
 0x17b   : > { %v428_v7 = vlaneseq (!%p556_p6)  ;;  %v423_v9 = vld [vmem:[#allocation7] sm:$0xff] (!%p556_p6)  ;;  %v424_v11 = vld [vmem:[#allocation7 + $0x8] sm:$0xff] (!%p556_p6)  ;;  %v425_v12 = vld [vmem:[#allocation7 + $0x10] sm:$0xff] (!%p556_p6) }
 0x17c   : > { %422 = sbr.rel (%p556_p6) target bundleno = 395 (0x18b), region = 52  ;;  %v426_v13 = vld [vmem:[#allocation7 + $0x18] sm:$0xff] (!%p556_p6) }
 0x17d   : > { %v429_v8 = vshrl.u32 (!%p556_p6), %v428_v7, 7 }
 0x17f   : > { %v430_v10 = vsub.s32 (!%p556_p6), 0, %v429_v8 }
 0x181   : > { %v431_v14 = vrot.slane (!%p556_p6), %v379_v44, %v430_v10  ;;  %v441_v15 = vrot.slane (!%p556_p6), %v382_v47, %v430_v10 }
 0x183   : > { %v433_v16 = vmul.f32 %v431_v14, %v423_v9  ;;  %v434_v17 = vmul.f32 %v431_v14, %v424_v11  ;;  %v435_v18 = vmul.f32 %v431_v14, %v425_v12  ;;  %v436_v19 = vmul.f32 %v431_v14, %v426_v13 }
 0x185   : > { %v443_v20 = vadd.f32 %v441_v15, %v433_v16  ;;  %v444_v21 = vadd.f32 %v441_v15, %v434_v17  ;;  %v445_v22 = vadd.f32 %v441_v15, %v435_v18  ;;  %v446_v23 = vadd.f32 %v441_v15, %v436_v19 }
 0x187   : > { %v447_v24 = vmax.f32 %v443_v20, 0.0  ;;  %v448_v25 = vmax.f32 %v444_v21, 0.0  ;;  %v449_v26 = vmax.f32 %v445_v22, 0.0  ;;  %v450_v27 = vmax.f32 %v446_v23, 0.0 }
 0x189   : > { %451 = vst [vmem:[#allocation7] sm:$0xff] %v447_v24  ;;  %452 = vst [vmem:[#allocation7 + $0x8] sm:$0xff] %v448_v25 }
 0x18a   : > { %453 = vst [vmem:[#allocation7 + $0x10] sm:$0xff] %v449_v26  ;;  %454 = vst [vmem:[#allocation7 + $0x18] sm:$0xff] %v450_v27 }
 0x18b PF: > { %s788_s30 = smov [#allocation7]  }
 0x18c   : > { %s461_s7 = sshll.u32 %s788_s30, 4  ;;  %s462_s7 = int_to_ptr.vmem [resolvable:$true] %s461_s7 }
 0x18d   : > { %s714_s8 = scalar_lea.vmem %s462_s7, 512  ;;  %p721_p1 = scmp.lt.s32.totalorder %s462_s7, %s462_s7 }
 0x18e   : > { %p715_p10 = scmp.ne.s32.totalorder %s462_s7, %s714_s8  ;;  %p722_p2 = scmp.lt.s32.totalorder %s714_s8, %s714_s8 }
 0x190   : > { %p716_p12 = pnand %p715_p10, %p555_p4  ;;  %p723_p11 = por %p722_p2, %p721_p1 }
 0x192   : > { %p717_p0 = pneg %p716_p12 }
 0x194   : > { %p724_p13 = pnand %p723_p11, %p717_p0 }
 0x196   : > { %727 = shalt.err (!%p724_p13)
}
 0x197   : > { %s728_s12 = scalar_lea.hbm %s1005_s4, 512 }
 0x198   : > { %p729_p3 = scmp.ne.s32.totalorder %s1005_s4, %s728_s12  ;;  %p734_p8 = scmp.lt.u32.totalorder %s728_s12, %s1005_s4 }
 0x19a   : > { %p730_p5 = pnand %p729_p3, %p555_p4 }
 0x19c   : > { %p731_p7 = pneg %p730_p5 }
 0x19e   : > { %p736_p9 = pnand %p734_p8, %p731_p7 }
 0x1a0   : > { %739 = shalt.err (!%p736_p9)
}
 0x1a1   : > { %s789_s21 = smov 128   ;;  %s790_s22 = smov 8  }
 0x1a2   : > { %599 = dma.vmem_to_hbm [thread:$0]  (%p555_p4), %s462_s7, 512, %s1005_s4, [#allocation6], %s789_s21, %s789_s21, %s790_s22  }
 0x1a3   : > { %765 = dma.done.wait (%p555_p4), [#allocation6], 512  }
 0x1a4   : > { %767 = vsyncadd (%p555_p4), [#allocation6], 4294966784 }
 0x1a5 PF: > { %p15_p6 = scmp.ge.s32.totalorder %s838_s20, 4   ;;  %s1015_s15 = smov %s774_s16 }
 0x1a6   : > { %s1016_s16 = smov %s778_s17  ;;  %s1017_s17 = smov %s848_s23 }
 0x1a7   : > { %s1018_s18 = smov %s838_s20  ;;  %17 = sbr.rel (!%p15_p6) target bundleno = 4 (0x4), region = 91 }
 0x1ae   :  { %477 = vsyncpa [#allocation5], 1 }
 0x1af   :  { %479 = vsyncpa [#allocation5 + $0x1], 1 }
 0x1b0   :  { %480 = vsyncpa [#allocation6], 1 }
 0x1b1   :  { %482 = vsyncpa [#allocation6 + $0x1], 1 }
 0x1b2   :  { %483 = vsyncmov [#allocation3] }
 0x1b5   :  { %s484_s19 = vpop.sfrf %483 }
 0x1b6   :  { %p561_p4 = scmp.ne.s32.totalorder %s484_s19, 0 }
 0x1b8   :  { %488 = shalt.err (%p561_p4)  }

</bundles_post_ra>
